<compile_context>
chip_gen: v7x
topology: tpu7x:2x2x1
jax: 0.10.0
libtpu: 0.0.40
codegen_flags: <defaults>
</compile_context>

<pallas_src>
import jax
import jax.numpy as jnp
from jax.experimental import pallas as pl
from jax.experimental.pallas import tpu as pltpu

_LANE = 128
_VMEM_BUDGET = 32 * 1024 * 1024      # target per-step working set
_VMEM_LIMIT = 48 * 1024 * 1024       # scoped VMEM limit passed to Mosaic (< v7x 64 MiB)


def _round_up(x, m):
    return (x + m - 1) // m * m


def _mlp_kernel(x_ref, w1_ref, b1_ref, w2_ref, b2_ref, w3_ref, b3_ref,
                mean_ref, logstd_ref):
    # Cast the obs tile to the MXU input dtype in-kernel (VPU slack); weights
    # are already bf16, biases f32, accumulation f32.
    x = x_ref[...].astype(w1_ref.dtype)
    h = jnp.dot(x, w1_ref[...], preferred_element_type=jnp.float32) + b1_ref[...]
    h = jnp.maximum(h, 0.0).astype(w2_ref.dtype)
    h = jnp.dot(h, w2_ref[...], preferred_element_type=jnp.float32) + b2_ref[...]
    h = jnp.maximum(h, 0.0).astype(w3_ref.dtype)
    out = jnp.dot(h, w3_ref[...], preferred_element_type=jnp.float32) + b3_ref[...]
    a = mean_ref.shape[-1]
    mean_ref[...] = out[:, :a].astype(mean_ref.dtype)
    logstd_ref[...] = out[:, a:].astype(logstd_ref.dtype)


def prepare_params(params, compute_dtype=jnp.bfloat16):
    """One-time parameter preparation (hoisted out of the per-call path)."""
    w1, b1, w2, b2, w3, b3 = params
    prep = lambda w, b: (jnp.asarray(w).astype(compute_dtype),
                         jnp.asarray(b).astype(jnp.float32).reshape(1, -1))
    w1c, b1f = prep(w1, b1)
    w2c, b2f = prep(w2, b2)
    w3c, b3f = prep(w3, b3)
    return (w1c, b1f, w2c, b2f, w3c, b3f)


def _choose_tile_chunks(n_chunks, max_chunks):
    """Largest divisor of n_chunks (128-row chunks) <= max_chunks, preferring
    >=2 grid steps when the batch spans >=2 chunks (v7x dual-TC sharding)."""
    max_chunks = max(1, min(max_chunks, n_chunks))
    if n_chunks >= 2:
        max_chunks = min(max_chunks, max(1, n_chunks // 2))
    for d in range(max_chunks, 0, -1):
        if n_chunks % d == 0:
            return d
    return 1


def gaussian_policy_forward(obs, prepped_params, action_dim, *, block_b=4096):
    """Fused MLP forward; returns (action_mean, action_log_std), f32 (B, A)."""
    w1, b1, w2, b2, w3, b3 = prepped_params
    B, in_dim = obs.shape
    h1 = w1.shape[1]
    h2 = w2.shape[1]
    out_dim = w3.shape[1]                       # 2 * action_dim (fix_std=False)
    assert out_dim == 2 * action_dim, "expected a (mean, log_std) head"

    # Pad the batch only to the next multiple of 128 (bounds waste < 128 rows).
    b_pad = _round_up(B, _LANE)
    n_chunks = b_pad // _LANE

    # Tile size: as large as block_b / VMEM budget allow, dividing the padded batch.
    w_bytes = sum(int(p.size) * p.dtype.itemsize for p in prepped_params)

    def _vmem_est(chunks):
        tb = chunks * _LANE
        io = 2 * tb * (in_dim + out_dim) * 4                  # double-buffered obs/out
        inter = 3 * tb * max(in_dim, h1, h2, out_dim) * 4     # activations (f32 + bf16)
        return io + inter + w_bytes

    max_chunks = max(1, block_b // _LANE)
    while max_chunks > 1 and _vmem_est(max_chunks) > _VMEM_BUDGET:
        max_chunks //= 2
    tb = _choose_tile_chunks(n_chunks, max_chunks) * _LANE

    if b_pad != B:
        obs = jnp.pad(obs, ((0, b_pad - B), (0, 0)))

    resident = lambda a: pl.BlockSpec(a.shape, lambda i: (0, 0))

    flops = 2 * b_pad * (in_dim * h1 + h1 * h2 + h2 * out_dim)
    bytes_accessed = (b_pad * in_dim * obs.dtype.itemsize
                      + w_bytes
                      + b_pad * out_dim * 4)

    mean_p, logstd_p = pl.pallas_call(
        _mlp_kernel,
        out_shape=(jax.ShapeDtypeStruct((b_pad, action_dim), jnp.float32),
                   jax.ShapeDtypeStruct((b_pad, action_dim), jnp.float32)),
        grid_spec=pl.GridSpec(
            grid=(b_pad // tb,),
            in_specs=[
                pl.BlockSpec((tb, in_dim), lambda i: (i, 0)),   # obs tile (f32)
                resident(w1), resident(b1),
                resident(w2), resident(b2),
                resident(w3), resident(b3),
            ],
            out_specs=(pl.BlockSpec((tb, action_dim), lambda i: (i, 0)),
                       pl.BlockSpec((tb, action_dim), lambda i: (i, 0))),
        ),
        compiler_params=pltpu.CompilerParams(
            dimension_semantics=("parallel",),
            vmem_limit_bytes=_VMEM_LIMIT,
        ),
        cost_estimate=pl.CostEstimate(
            flops=flops, transcendentals=0, bytes_accessed=bytes_accessed),
    )(obs, w1, b1, w2, b2, w3, b3)

    if b_pad != B:
        mean_p = mean_p[:B]
        logstd_p = logstd_p[:B]
    return mean_p, logstd_p


def init_params(key, input_dim, hidden_dims, action_dim):
    """PyTorch nn.Linear-style init: U(-1/sqrt(fan_in), 1/sqrt(fan_in)).

    Weights stored pre-transposed as (in, out) so the kernel computes x @ W + b.
    """
    dims = [input_dim] + list(hidden_dims) + [2 * action_dim]   # fix_std=False
    params = []
    for i in range(len(dims) - 1):
        fan_in, fan_out = dims[i], dims[i + 1]
        key, kw, kb = jax.random.split(key, 3)
        bound = 1.0 / jnp.sqrt(fan_in)
        w = jax.random.uniform(kw, (fan_in, fan_out), jnp.float32, -bound, bound)
        b = jax.random.uniform(kb, (1, fan_out), jnp.float32, -bound, bound)
        params.extend([w, b])
    return tuple(params)


def reference_forward(obs, params, action_dim, compute_dtype=jnp.bfloat16):
    """Plain-JAX reference mirroring the kernel's bf16-input / f32-acc math."""
    w1, b1, w2, b2, w3, b3 = params
    c = compute_dtype
    h = jnp.dot(obs.astype(c), w1.astype(c),
                preferred_element_type=jnp.float32) + b1
    h = jnp.maximum(h, 0.0)
    h = jnp.dot(h.astype(c), w2.astype(c),
                preferred_element_type=jnp.float32) + b2
    h = jnp.maximum(h, 0.0)
    out = jnp.dot(h.astype(c), w3.astype(c),
                  preferred_element_type=jnp.float32) + b3
    return out[:, :action_dim], out[:, action_dim:]


if __name__ == "__main__":
    # Small shapes consistent with the module: flat observation -> MLP policy.
    batch = 8
    input_dim = 32
    hidden_dims = [32, 32]
    action_dim = 4

    key = jax.random.PRNGKey(0)
    key, kobs = jax.random.split(key)
    obs = jax.random.normal(kobs, (batch, input_dim), dtype=jnp.float32)
    params = init_params(key, input_dim, hidden_dims, action_dim)
    prepped = prepare_params(params)            # one-time prep, reused per call

    mean, log_std = gaussian_policy_forward(obs, prepped, action_dim)
    mean = jax.block_until_ready(mean)
    log_std = jax.block_until_ready(log_std)

    ref_mean, ref_log_std = reference_forward(obs, params, action_dim)
    assert mean.shape == (batch, action_dim)
    assert log_std.shape == (batch, action_dim)
    assert jnp.allclose(mean, ref_mean, atol=1e-3, rtol=1e-3)
    assert jnp.allclose(log_std, ref_log_std, atol=1e-3, rtol=1e-3)

    # Exercise the multi-step grid (>=2 steps for v7x) + batch-padding path.
    batch2 = 200
    key, kobs2 = jax.random.split(key)
    obs2 = jax.random.normal(kobs2, (batch2, input_dim), dtype=jnp.float32)
    mean2, log_std2 = gaussian_policy_forward(obs2, prepped, action_dim)
    mean2 = jax.block_until_ready(mean2)
    log_std2 = jax.block_until_ready(log_std2)
    ref_mean2, ref_log_std2 = reference_forward(obs2, params, action_dim)
    assert mean2.shape == (batch2, action_dim)
    assert log_std2.shape == (batch2, action_dim)
    assert jnp.allclose(mean2, ref_mean2, atol=1e-3, rtol=1e-3)
    assert jnp.allclose(log_std2, ref_log_std2, atol=1e-3, rtol=1e-3)

    # TODO(synk): sample()/evaluate_actions() (Normal sampling, tanh squash,
    # log-prob/entropy) and the log_std clamp live outside forward(); only the
    # forward() contract is kernelized here.
    print("KERNEL_OK")
</pallas_src>

<mosaic_0001>
module attributes {stable_mosaic.version = 11 : i64} {
  func.func @_mlp_kernel(%arg0: i32, %arg1: memref<128x32xf32, #tpu.memory_space<vmem>>, %arg2: memref<32x32xbf16, #tpu.memory_space<vmem>>, %arg3: memref<1x32xf32, #tpu.memory_space<vmem>>, %arg4: memref<32x32xbf16, #tpu.memory_space<vmem>>, %arg5: memref<1x32xf32, #tpu.memory_space<vmem>>, %arg6: memref<32x8xbf16, #tpu.memory_space<vmem>>, %arg7: memref<1x8xf32, #tpu.memory_space<vmem>>, %arg8: memref<128x4xf32, #tpu.memory_space<vmem>>, %arg9: memref<128x4xf32, #tpu.memory_space<vmem>>) attributes {dimension_semantics = [#tpu.dimension_semantics<parallel>], iteration_bounds = array<i64: 1>, scalar_prefetch = 0 : i64, scratch_operands = 0 : i64, tpu.core_type = #tpu.core_type<tc>, window_params = [{transform_indices = @transform_0, window_bounds = array<i64: 128, 32>}, {pipeline_mode = #tpu.pipeline_mode<synchronous>, transform_indices = @transform_1, window_bounds = array<i64: 32, 32>}, {pipeline_mode = #tpu.pipeline_mode<synchronous>, transform_indices = @transform_2, window_bounds = array<i64: 1, 32>}, {pipeline_mode = #tpu.pipeline_mode<synchronous>, transform_indices = @transform_3, window_bounds = array<i64: 32, 32>}, {pipeline_mode = #tpu.pipeline_mode<synchronous>, transform_indices = @transform_4, window_bounds = array<i64: 1, 32>}, {pipeline_mode = #tpu.pipeline_mode<synchronous>, transform_indices = @transform_5, window_bounds = array<i64: 32, 8>}, {pipeline_mode = #tpu.pipeline_mode<synchronous>, transform_indices = @transform_6, window_bounds = array<i64: 1, 8>}, {transform_indices = @transform_7, window_bounds = array<i64: 128, 4>}, {transform_indices = @transform_8, window_bounds = array<i64: 128, 4>}]} {
    %c0 = arith.constant 0 : index
    %c0_0 = arith.constant 0 : index
    %0 = vector.load %arg1[%c0, %c0_0] : memref<128x32xf32, #tpu.memory_space<vmem>>, vector<128x32xf32>
    %1 = arith.truncf %0 : vector<128x32xf32> to vector<128x32xbf16>
    %c0_1 = arith.constant 0 : index
    %c0_2 = arith.constant 0 : index
    %2 = vector.load %arg2[%c0_1, %c0_2] : memref<32x32xbf16, #tpu.memory_space<vmem>>, vector<32x32xbf16>
    %cst = arith.constant dense<0.000000e+00> : vector<128x32xf32>
    %3 = tpu.matmul %1, %2, %cst {dimension_numbers = #tpu.dot_dimension_numbers<[1], [0], [0], [1], [0, 0, 1, 1], [], []>} : vector<128x32xbf16>, vector<32x32xbf16>, vector<128x32xf32> -> vector<128x32xf32>
    %c0_3 = arith.constant 0 : index
    %c0_4 = arith.constant 0 : index
    %4 = vector.load %arg3[%c0_3, %c0_4] : memref<1x32xf32, #tpu.memory_space<vmem>>, vector<1x32xf32>
    %5 = vector.broadcast %4 : vector<1x32xf32> to vector<128x32xf32>
    %6 = arith.addf %3, %5 : vector<128x32xf32>
    %cst_5 = arith.constant 0.000000e+00 : f32
    %7 = vector.broadcast %cst_5 : f32 to vector<128x32xf32>
    %8 = arith.maximumf %6, %7 : vector<128x32xf32>
    %9 = arith.truncf %8 : vector<128x32xf32> to vector<128x32xbf16>
    %c0_6 = arith.constant 0 : index
    %c0_7 = arith.constant 0 : index
    %10 = vector.load %arg4[%c0_6, %c0_7] : memref<32x32xbf16, #tpu.memory_space<vmem>>, vector<32x32xbf16>
    %cst_8 = arith.constant dense<0.000000e+00> : vector<128x32xf32>
    %11 = tpu.matmul %9, %10, %cst_8 {dimension_numbers = #tpu.dot_dimension_numbers<[1], [0], [0], [1], [0, 0, 1, 1], [], []>} : vector<128x32xbf16>, vector<32x32xbf16>, vector<128x32xf32> -> vector<128x32xf32>
    %c0_9 = arith.constant 0 : index
    %c0_10 = arith.constant 0 : index
    %12 = vector.load %arg5[%c0_9, %c0_10] : memref<1x32xf32, #tpu.memory_space<vmem>>, vector<1x32xf32>
    %13 = vector.broadcast %12 : vector<1x32xf32> to vector<128x32xf32>
    %14 = arith.addf %11, %13 : vector<128x32xf32>
    %cst_11 = arith.constant 0.000000e+00 : f32
    %15 = vector.broadcast %cst_11 : f32 to vector<128x32xf32>
    %16 = arith.maximumf %14, %15 : vector<128x32xf32>
    %17 = arith.truncf %16 : vector<128x32xf32> to vector<128x32xbf16>
    %c0_12 = arith.constant 0 : index
    %c0_13 = arith.constant 0 : index
    %18 = vector.load %arg6[%c0_12, %c0_13] : memref<32x8xbf16, #tpu.memory_space<vmem>>, vector<32x8xbf16>
    %cst_14 = arith.constant dense<0.000000e+00> : vector<128x8xf32>
    %19 = tpu.matmul %17, %18, %cst_14 {dimension_numbers = #tpu.dot_dimension_numbers<[1], [0], [0], [1], [0, 0, 1, 1], [], []>} : vector<128x32xbf16>, vector<32x8xbf16>, vector<128x8xf32> -> vector<128x8xf32>
    %c0_15 = arith.constant 0 : index
    %c0_16 = arith.constant 0 : index
    %20 = vector.load %arg7[%c0_15, %c0_16] : memref<1x8xf32, #tpu.memory_space<vmem>>, vector<1x8xf32>
    %21 = vector.broadcast %20 : vector<1x8xf32> to vector<128x8xf32>
    %22 = arith.addf %19, %21 : vector<128x8xf32>
    %23 = vector.extract_strided_slice %22 {offsets = [0, 0], sizes = [128, 4], strides = [1, 1]} : vector<128x8xf32> to vector<128x4xf32>
    %c0_17 = arith.constant 0 : index
    %c0_18 = arith.constant 0 : index
    %24 = vector.load %arg8[%c0_17, %c0_18] : memref<128x4xf32, #tpu.memory_space<vmem>>, vector<128x4xf32>
    tpu.vector_store %arg8[%c0_17, %c0_18], %23 {strides = array<i32>} : memref<128x4xf32, #tpu.memory_space<vmem>>, vector<128x4xf32>,
    %25 = vector.extract_strided_slice %22 {offsets = [0, 4], sizes = [128, 4], strides = [1, 1]} : vector<128x8xf32> to vector<128x4xf32>
    %c0_19 = arith.constant 0 : index
    %c0_20 = arith.constant 0 : index
    %26 = vector.load %arg9[%c0_19, %c0_20] : memref<128x4xf32, #tpu.memory_space<vmem>>, vector<128x4xf32>
    tpu.vector_store %arg9[%c0_19, %c0_20], %25 {strides = array<i32>} : memref<128x4xf32, #tpu.memory_space<vmem>>, vector<128x4xf32>,
    return
  }
  func.func @transform_0(%arg0: i32) -> (i32, i32) {
    %c0_i32 = arith.constant 0 : i32
    %c0_i32_0 = arith.constant 0 : i32
    return %arg0, %c0_i32 : i32, i32
  }
  func.func @transform_1(%arg0: i32) -> (i32, i32) {
    %c0_i32 = arith.constant 0 : i32
    %c0_i32_0 = arith.constant 0 : i32
    %c0_i32_1 = arith.constant 0 : i32
    return %c0_i32, %c0_i32_0 : i32, i32
  }
  func.func @transform_2(%arg0: i32) -> (i32, i32) {
    %c0_i32 = arith.constant 0 : i32
    %c0_i32_0 = arith.constant 0 : i32
    %c0_i32_1 = arith.constant 0 : i32
    return %c0_i32, %c0_i32_0 : i32, i32
  }
  func.func @transform_3(%arg0: i32) -> (i32, i32) {
    %c0_i32 = arith.constant 0 : i32
    %c0_i32_0 = arith.constant 0 : i32
    %c0_i32_1 = arith.constant 0 : i32
    return %c0_i32, %c0_i32_0 : i32, i32
  }
  func.func @transform_4(%arg0: i32) -> (i32, i32) {
    %c0_i32 = arith.constant 0 : i32
    %c0_i32_0 = arith.constant 0 : i32
    %c0_i32_1 = arith.constant 0 : i32
    return %c0_i32, %c0_i32_0 : i32, i32
  }
  func.func @transform_5(%arg0: i32) -> (i32, i32) {
    %c0_i32 = arith.constant 0 : i32
    %c0_i32_0 = arith.constant 0 : i32
    %c0_i32_1 = arith.constant 0 : i32
    return %c0_i32, %c0_i32_0 : i32, i32
  }
  func.func @transform_6(%arg0: i32) -> (i32, i32) {
    %c0_i32 = arith.constant 0 : i32
    %c0_i32_0 = arith.constant 0 : i32
    %c0_i32_1 = arith.constant 0 : i32
    return %c0_i32, %c0_i32_0 : i32, i32
  }
  func.func @transform_7(%arg0: i32) -> (i32, i32) {
    %c0_i32 = arith.constant 0 : i32
    %c0_i32_0 = arith.constant 0 : i32
    return %arg0, %c0_i32 : i32, i32
  }
  func.func @transform_8(%arg0: i32) -> (i32, i32) {
    %c0_i32 = arith.constant 0 : i32
    %c0_i32_0 = arith.constant 0 : i32
    return %arg0, %c0_i32 : i32, i32
  }
}

</mosaic_0001>

<bundles_post_ra>
// kernel: tpu_custom_call.1
= control target key start
LH: loop header
LB: loop body
LE: loop exit
PB: predicated region body
PF: predicated region fallthrough
CT: control target
= control target key end

     0   :  { %vm76_vm0 = vcmask 261120   ;;  %vm534_vm1 = vcmask 31744   ;;  %s773_s28 = smov 124   ;;  %s1062_s1 = inlined_call_operand.vmem [shape: bf16[32,32], index: 1, kind: input, shape index: {}]   ;;  %s1063_s0 = inlined_call_operand.vmem [shape: f32[128,32], index: 0, kind: input, shape index: {}]   ;;  %s1064_s3 = inlined_call_operand.vmem [shape: bf16[32,32], index: 3, kind: input, shape index: {}]   ;;  %s1065_s5 = inlined_call_operand.vmem [shape: bf16[32,8], index: 5, kind: input, shape index: {}]   ;;  %s1066_s2 = inlined_call_operand.vmem [shape: f32[1,32], index: 2, kind: input, shape index: {}]   ;;  %s1067_s4 = inlined_call_operand.vmem [shape: f32[1,32], index: 4, kind: input, shape index: {}]   ;;  %s1068_s6 = inlined_call_operand.vmem [shape: f32[1,8], index: 6, kind: input, shape index: {}]   ;;  %s1069_s7 = inlined_call_operand.vmem [shape: f32[128,4], index: 7, kind: output, shape index: {0}]   ;;  %s1070_s8 = inlined_call_operand.vmem [shape: f32[128,4], index: 8, kind: output, shape index: {1}]  }
   0x1   :  { %v767_v0 = vld [vmem:[%s1062_s1] sm:$0xff]   ;;  %v768_v1 = vld [vmem:[%s1062_s1 + $0x8] sm:$0xff]   ;;  %v31_v5 = vld [vmem:[%s1063_s0 + $0x10] sm:$0xff] }
   0x2   :  { %702 = vmatprep.subr.bf16.mxu0 %v767_v0  ;;  %v29_v2 = vld [vmem:[%s1063_s0] sm:$0xff]  ;;  %v30_v3 = vld [vmem:[%s1063_s0 + $0x8] sm:$0xff]  ;;  %762 = vmatprep.subr.bf16.mxu1 %v767_v0  ;;  %v32_v6 = vld [vmem:[%s1063_s0 + $0x18] sm:$0xff] }
   0x3   :  { %703 = vmatpush3.bf16.msra.mxu0 %v767_v0  ;;  %v45_v4 = vpack.c.bf16 %v30_v3, %v29_v2  ;;  %764 = vmatpush3.bf16.msra.mxu1 %v767_v0  ;;  %v33_v7 = vld [vmem:[%s1063_s0 + $0x20] sm:$0xff]  ;;  %v34_v8 = vld [vmem:[%s1063_s0 + $0x28] sm:$0xff]  ;;  %v39_v11 = vld [vmem:[%s1063_s0 + $0x50] sm:$0xff]  ;;  %v46_v13 = vpack.c.bf16 %v32_v6, %v31_v5 }
   0x4   :  { %704 = vmatprep.subr.bf16.mxu0 %v768_v1  ;;  %763 = vmatprep.subr.bf16.mxu1 %v768_v1  ;;  %v37_v9 = vld [vmem:[%s1063_s0 + $0x40] sm:$0xff]  ;;  %v38_v10 = vld [vmem:[%s1063_s0 + $0x48] sm:$0xff]  ;;  %v40_v12 = vld [vmem:[%s1063_s0 + $0x58] sm:$0xff]  ;;  %v47_v18 = vpack.c.bf16 %v34_v8, %v33_v7 }
   0x5   :  { %706 = vmatprep.mubr.msk.bf16.mxu0 %vm76_vm0, %v45_v4  ;;  %v49_v14 = vpack.c.bf16 %v38_v10, %v37_v9  ;;  %v50_v15 = vpack.c.bf16 %v40_v12, %v39_v11  ;;  %v41_v16 = vld [vmem:[%s1063_s0 + $0x60] sm:$0xff]  ;;  %v42_v17 = vld [vmem:[%s1063_s0 + $0x68] sm:$0xff]  ;;  %v35_v21 = vld [vmem:[%s1063_s0 + $0x30] sm:$0xff] }
   0x6   :  { %v51_v19 = vpack.c.bf16 %v42_v17, %v41_v16  ;;  %v769_v20 = vld [vmem:[%s1064_s3] sm:$0xff]   ;;  %v36_v22 = vld [vmem:[%s1063_s0 + $0x38] sm:$0xff]  ;;  %v43_v23 = vld [vmem:[%s1063_s0 + $0x70] sm:$0xff] }
   0x7   :  { %705 = vmatpush3.bf16.msra.mxu0 %v768_v1  ;;  %765 = vmatpush3.bf16.msra.mxu1 %v768_v1  ;;  %v44_v24 = vld [vmem:[%s1063_s0 + $0x78] sm:$0xff]  ;;  %v48_v25 = vpack.c.bf16 %v36_v22, %v35_v21  ;;  %v770_v27 = vld [vmem:[%s1064_s3 + $0x8] sm:$0xff]   ;;  %v771_v28 = vld [vmem:[%s1065_s5] sm:$0xff]  }
   0x8   :  { %714 = vmatprep.mubr.msk.bf16.mxu1 %vm76_vm0, %v49_v14  ;;  %722 = vmatprep.subr.bf16.mxu1 %v769_v20  ;;  %v52_v26 = vpack.c.bf16 %v44_v24, %v43_v23  ;;  %v639_v29 = vld [vmem:[%s1066_s2] ss:$0 sm:$0xff]  ;;  %v772_v22 = vld [vmem:[%s1065_s5 + $0x8] sm:$0xff]  }
   0x9   :  { %742 = vmatprep.subr.bf16.mxu0 %v771_v28  ;;  %v650_v23 = vld [vmem:[%s1067_s4] ss:$0 sm:$0xff] }
   0xa   :  { %707 = vmatmul.mubr.msk.bf16.vlgmr.msra.gmra.mrb[0].mxu0 %vm76_vm0, %v46_v13  ;;  %715 = vmatmul.mubr.msk.bf16.vlgmr.msra.gmra.mrb[0].mxu1 %vm76_vm0, %v50_v15 }
   0xb   :  { %710 = vmatprep.mubr.msk.bf16.mxu0 %vm76_vm0, %v47_v18  ;;  %718 = vmatprep.mubr.msk.bf16.mxu1 %vm76_vm0, %v51_v19 }
   0xc   :  { %723 = vmatpush3.bf16.msra.mxu1 %v769_v20  ;;  %743 = vmatpush3.bf16.msra.mxu0 %v771_v28 }
   0xd   :  { %724 = vmatprep.subr.bf16.mxu1 %v770_v27  ;;  %744 = vmatprep.subr.bf16.mxu0 %v772_v22 }
  0x10   :  { %725 = vmatpush3.bf16.msra.mxu1 %v770_v27  ;;  %745 = vmatpush3.bf16.msra.mxu0 %v772_v22 }
  0x12   :  { %711 = vmatmul.mubr.msk.bf16.gmra.mrb[4].mxu0 %vm76_vm0, %v48_v25  ;;  %719 = vmatmul.mubr.msk.bf16.gmra.mrb[4].mxu1 %vm76_vm0, %v52_v26 }
  0xdd   :  { %v708_v30 = vpop.f32.mrb[0].mxu0  ;;  %v716_v31 = vpop.f32.mrb[0].mxu1 }
  0xde   :  { %v144_v32 = vadd.f32 %v708_v30, %v639_v29  ;;  %v135_v33 = vpop.f32.mrb[1].mxu0  ;;  %v176_v34 = vadd.f32 %v716_v31, %v639_v29  ;;  %v167_v35 = vpop.f32.mrb[1].mxu1 }
  0xdf   :  { %v136_v36 = vadd.f32 %v639_v29, %v135_v33  ;;  %v709_v37 = vpop.f32.mrb[2].mxu0  ;;  %v168_v38 = vadd.f32 %v639_v29, %v167_v35  ;;  %v717_v39 = vpop.f32.mrb[2].mxu1 }
  0xe0   :  { %v147_v40 = vadd.f32 %v709_v37, %v639_v29  ;;  %v138_v41 = vpop.f32.mrb[3].mxu0  ;;  %v208_v42 = vmax.f32 %v176_v34, 0.0  ;;  %v179_v43 = vadd.f32 %v717_v39, %v639_v29  ;;  %v170_v44 = vpop.f32.mrb[3].mxu1  ;;  %v200_v48 = vmax.f32 %v144_v32, 0.0 }
  0xe1   :  { %v139_v45 = vadd.f32 %v639_v29, %v138_v41  ;;  %v206_v46 = vmax.f32 %v168_v38, 0.0  ;;  %v171_v47 = vadd.f32 %v639_v29, %v170_v44  ;;  %v198_v51 = vmax.f32 %v136_v36, 0.0 }
  0xe2   :  { %v201_v49 = vmax.f32 %v147_v40, 0.0  ;;  %v209_v50 = vmax.f32 %v179_v43, 0.0 }
  0xe3   :  { %v199_v52 = vmax.f32 %v139_v45, 0.0  ;;  %v207_v53 = vmax.f32 %v171_v47, 0.0 }
  0xe4   :  { %v215_v54 = vpack.c.bf16 %v201_v49, %v200_v48  ;;  %v219_v55 = vpack.c.bf16 %v209_v50, %v208_v42 }
  0xe5   :  { %v214_v56 = vpack.c.bf16 %v199_v52, %v198_v51  ;;  %v712_v57 = vpop.f32.mrb[4].mxu0  ;;  %v218_v58 = vpack.c.bf16 %v207_v53, %v206_v46  ;;  %v720_v59 = vpop.f32.mrb[4].mxu1 }
  0xe6   :  { %v160_v60 = vadd.f32 %v712_v57, %v639_v29  ;;  %v151_v61 = vpop.f32.mrb[5].mxu0  ;;  %v192_v62 = vadd.f32 %v720_v59, %v639_v29  ;;  %v183_v63 = vpop.f32.mrb[5].mxu1 }
  0xe7   :  { %v152_v0 = vadd.f32 %v639_v29, %v151_v61  ;;  %v713_v1 = vpop.f32.mrb[6].mxu0  ;;  %726 = vmatprep.mubr.msk.bf16.mxu1 %vm76_vm0, %v214_v56  ;;  %v184_v2 = vadd.f32 %v639_v29, %v183_v63  ;;  %v721_v3 = vpop.f32.mrb[6].mxu1 }
  0xe8   :  { %v163_v4 = vadd.f32 %v713_v1, %v639_v29  ;;  %v154_v5 = vpop.f32.mrb[7].mxu0  ;;  %727 = vmatmul.mubr.msk.bf16.vlgmr.msra.gmra.mrb[8].mxu1 %vm76_vm0, %v215_v54  ;;  %v212_v6 = vmax.f32 %v192_v62, 0.0  ;;  %v195_v7 = vadd.f32 %v721_v3, %v639_v29  ;;  %v186_v8 = vpop.f32.mrb[7].mxu1  ;;  %v204_v12 = vmax.f32 %v160_v60, 0.0 }
  0xe9   :  { %v155_v9 = vadd.f32 %v639_v29, %v154_v5  ;;  %v210_v10 = vmax.f32 %v184_v2, 0.0  ;;  %v187_v11 = vadd.f32 %v639_v29, %v186_v8  ;;  %v202_v15 = vmax.f32 %v152_v0, 0.0 }
  0xea   :  { %v205_v13 = vmax.f32 %v163_v4, 0.0  ;;  %v213_v14 = vmax.f32 %v195_v7, 0.0 }
  0xeb   :  { %v203_v16 = vmax.f32 %v155_v9, 0.0  ;;  %v211_v17 = vmax.f32 %v187_v11, 0.0 }
  0xec   :  { %v217_v18 = vpack.c.bf16 %v205_v13, %v204_v12  ;;  %v221_v19 = vpack.c.bf16 %v213_v14, %v212_v6 }
  0xed   :  { %v216_v20 = vpack.c.bf16 %v203_v16, %v202_v15  ;;  %v220_v21 = vpack.c.bf16 %v211_v17, %v210_v10  ;;  %v661_v16 = vld [vmem:[%s1068_s6] ss:$0 sm:$0xff] }
  0xef   :  { %730 = vmatprep.mubr.msk.bf16.mxu1 %vm76_vm0, %v216_v20 }
  0xf0   :  { %731 = vmatmul.mubr.msk.bf16.gmra.mrb[12].mxu1 %vm76_vm0, %v217_v18 }
  0xf1   :  { %734 = vmatprep.mubr.msk.bf16.mxu1 %vm76_vm0, %v218_v58 }
  0xf8   :  { %735 = vmatmul.mubr.msk.bf16.gmra.mrb[16].mxu1 %vm76_vm0, %v219_v55 }
  0xf9   :  { %738 = vmatprep.mubr.msk.bf16.mxu1 %vm76_vm0, %v220_v21 }
 0x100   :  { %739 = vmatmul.mubr.msk.bf16.gmra.mrb[20].mxu1 %vm76_vm0, %v221_v19 }
 0x1bb   :  { %v728_v24 = vpop.f32.mrb[8].mxu1 }
 0x1bc   :  { %v312_v25 = vadd.f32 %v728_v24, %v650_v23  ;;  %v303_v26 = vpop.f32.mrb[9].mxu1 }
 0x1bd   :  { %v304_v27 = vadd.f32 %v650_v23, %v303_v26  ;;  %v729_v28 = vpop.f32.mrb[10].mxu1 }
 0x1be   :  { %v315_v29 = vadd.f32 %v729_v28, %v650_v23  ;;  %v306_v30 = vpop.f32.mrb[11].mxu1  ;;  %v368_v32 = vmax.f32 %v312_v25, 0.0 }
 0x1bf   :  { %v307_v31 = vadd.f32 %v650_v23, %v306_v30  ;;  %v366_v34 = vmax.f32 %v304_v27, 0.0 }
 0x1c0   :  { %v369_v33 = vmax.f32 %v315_v29, 0.0 }
 0x1c1   :  { %v367_v35 = vmax.f32 %v307_v31, 0.0 }
 0x1c2   :  { %v383_v36 = vpack.c.bf16 %v369_v33, %v368_v32 }
 0x1c3   :  { %v382_v37 = vpack.c.bf16 %v367_v35, %v366_v34  ;;  %v732_v38 = vpop.f32.mrb[12].mxu1 }
 0x1c4   :  { %v328_v39 = vadd.f32 %v732_v38, %v650_v23  ;;  %v319_v40 = vpop.f32.mrb[13].mxu1 }
 0x1c5   :  { %v320_v41 = vadd.f32 %v650_v23, %v319_v40  ;;  %v733_v42 = vpop.f32.mrb[14].mxu1  ;;  %746 = vmatprep.mubr.msk.bf16.mxu0 %vm76_vm0, %v382_v37 }
 0x1c6   :  { %v331_v43 = vadd.f32 %v733_v42, %v650_v23  ;;  %v322_v44 = vpop.f32.mrb[15].mxu1  ;;  %747 = vmatmul.mubr.msk.bf16.vlgmr.msra.gmra.mrb[8].mxu0 %vm76_vm0, %v383_v36  ;;  %v372_v46 = vmax.f32 %v328_v39, 0.0 }
 0x1c7   :  { %v323_v45 = vadd.f32 %v650_v23, %v322_v44  ;;  %v370_v48 = vmax.f32 %v320_v41, 0.0 }
 0x1c8   :  { %v373_v47 = vmax.f32 %v331_v43, 0.0 }
 0x1c9   :  { %v371_v49 = vmax.f32 %v323_v45, 0.0 }
 0x1ca   :  { %v385_v50 = vpack.c.bf16 %v373_v47, %v372_v46 }
 0x1cb   :  { %v384_v51 = vpack.c.bf16 %v371_v49, %v370_v48  ;;  %v736_v52 = vpop.f32.mrb[16].mxu1 }
 0x1cc   :  { %v344_v53 = vadd.f32 %v736_v52, %v650_v23  ;;  %v335_v54 = vpop.f32.mrb[17].mxu1 }
 0x1cd   :  { %v336_v55 = vadd.f32 %v650_v23, %v335_v54  ;;  %v737_v56 = vpop.f32.mrb[18].mxu1  ;;  %750 = vmatprep.mubr.msk.bf16.mxu0 %vm76_vm0, %v384_v51 }
 0x1ce   :  { %v347_v57 = vadd.f32 %v737_v56, %v650_v23  ;;  %v338_v58 = vpop.f32.mrb[19].mxu1  ;;  %751 = vmatmul.mubr.msk.bf16.gmra.mrb[12].mxu0 %vm76_vm0, %v385_v50  ;;  %v376_v60 = vmax.f32 %v344_v53, 0.0 }
 0x1cf   :  { %v339_v59 = vadd.f32 %v650_v23, %v338_v58  ;;  %v374_v62 = vmax.f32 %v336_v55, 0.0 }
 0x1d0   :  { %v377_v61 = vmax.f32 %v347_v57, 0.0 }
 0x1d1   :  { %v375_v63 = vmax.f32 %v339_v59, 0.0 }
 0x1d2   :  { %v387_v0 = vpack.c.bf16 %v377_v61, %v376_v60 }
 0x1d3   :  { %v386_v1 = vpack.c.bf16 %v375_v63, %v374_v62  ;;  %v740_v2 = vpop.f32.mrb[20].mxu1 }
 0x1d4   :  { %v360_v3 = vadd.f32 %v740_v2, %v650_v23  ;;  %v351_v4 = vpop.f32.mrb[21].mxu1 }
 0x1d5   :  { %v352_v5 = vadd.f32 %v650_v23, %v351_v4  ;;  %v741_v6 = vpop.f32.mrb[22].mxu1  ;;  %754 = vmatprep.mubr.msk.bf16.mxu0 %vm76_vm0, %v386_v1 }
 0x1d6   :  { %v363_v7 = vadd.f32 %v741_v6, %v650_v23  ;;  %v354_v8 = vpop.f32.mrb[23].mxu1  ;;  %755 = vmatmul.mubr.msk.bf16.gmra.mrb[16].mxu0 %vm76_vm0, %v387_v0  ;;  %v380_v10 = vmax.f32 %v360_v3, 0.0 }
 0x1d7   :  { %v355_v9 = vadd.f32 %v650_v23, %v354_v8  ;;  %v378_v12 = vmax.f32 %v352_v5, 0.0 }
 0x1d8   :  { %v381_v11 = vmax.f32 %v363_v7, 0.0 }
 0x1d9   :  { %v379_v13 = vmax.f32 %v355_v9, 0.0 }
 0x1da   :  { %v389_v14 = vpack.c.bf16 %v381_v11, %v380_v10 }
 0x1db   :  { %v388_v15 = vpack.c.bf16 %v379_v13, %v378_v12 }
 0x1dd   :  { %758 = vmatprep.mubr.msk.bf16.mxu0 %vm76_vm0, %v388_v15 }
 0x1de   :  { %759 = vmatmul.mubr.msk.bf16.gmra.mrb[20].mxu0 %vm76_vm0, %v389_v14 }
 0x299   :  { %v748_v17 = vpop.f32.mrb[8].mxu0 }
 0x29a   :  { %v480_v18 = vadd.f32 %v748_v17, %v661_v16  ;;  %v471_v19 = vpop.f32.mrb[9].mxu0 }
 0x29b   :  { %v472_v20 = vadd.f32 %v661_v16, %v471_v19  ;;  %v749_v21 = vpop.f32.mrb[10].mxu0 }
 0x29c   :  { %537 = vst.msk [vmem:[%s1069_s7 + $0x10] sm:$0xff] %vm534_vm1, %v480_v18  ;;  %v483_v22 = vadd.f32 %v749_v21, %v661_v16  ;;  %571 = vrot.lane.b32.xlu1 %v480_v18, %s773_s28  ;;  %v474_v23 = vpop.f32.mrb[11].mxu0 }
 0x29d   :  { %535 = vst.msk [vmem:[%s1069_s7] sm:$0xff] %vm534_vm1, %v472_v20  ;;  %v475_v24 = vadd.f32 %v661_v16, %v474_v23  ;;  %567 = vrot.lane.b32.xlu0 %v472_v20, %s773_s28 }
 0x29e   :  { %538 = vst.msk [vmem:[%s1069_s7 + $0x18] sm:$0xff] %vm534_vm1, %v483_v22 }
 0x29f   :  { %536 = vst.msk [vmem:[%s1069_s7 + $0x8] sm:$0xff] %vm534_vm1, %v475_v24 }
 0x2a0   :  { %573 = vrot.lane.b32.xlu1 %v483_v22, %s773_s28 }
 0x2a1   :  { %v752_v25 = vpop.f32.mrb[12].mxu0  ;;  %569 = vrot.lane.b32.xlu0 %v475_v24, %s773_s28 }
 0x2a2   :  { %v496_v26 = vadd.f32 %v752_v25, %v661_v16  ;;  %v487_v27 = vpop.f32.mrb[13].mxu0 }
 0x2a3   :  { %v488_v28 = vadd.f32 %v661_v16, %v487_v27  ;;  %v753_v29 = vpop.f32.mrb[14].mxu0 }
 0x2a4   :  { %541 = vst.msk [vmem:[%s1069_s7 + $0x30] sm:$0xff] %vm534_vm1, %v496_v26  ;;  %v499_v30 = vadd.f32 %v753_v29, %v661_v16  ;;  %v490_v31 = vpop.f32.mrb[15].mxu0 }
 0x2a5   :  { %539 = vst.msk [vmem:[%s1069_s7 + $0x20] sm:$0xff] %vm534_vm1, %v488_v28  ;;  %v491_v32 = vadd.f32 %v661_v16, %v490_v31  ;;  %579 = vrot.lane.b32.xlu0 %v496_v26, %s773_s28 }
 0x2a6   :  { %542 = vst.msk [vmem:[%s1069_s7 + $0x38] sm:$0xff] %vm534_vm1, %v499_v30  ;;  %581 = vrot.lane.b32.xlu1 %v499_v30, %s773_s28 }
 0x2a7   :  { %540 = vst.msk [vmem:[%s1069_s7 + $0x28] sm:$0xff] %vm534_vm1, %v491_v32 }
 0x2a9   :  { %v756_v33 = vpop.f32.mrb[16].mxu0  ;;  %575 = vrot.lane.b32.xlu0 %v488_v28, %s773_s28 }
 0x2aa   :  { %v512_v34 = vadd.f32 %v756_v33, %v661_v16  ;;  %v503_v35 = vpop.f32.mrb[17].mxu0  ;;  %577 = vrot.lane.b32.xlu1 %v491_v32, %s773_s28 }
 0x2ab   :  { %v504_v36 = vadd.f32 %v661_v16, %v503_v35  ;;  %v757_v37 = vpop.f32.mrb[18].mxu0 }
 0x2ac   :  { %545 = vst.msk [vmem:[%s1069_s7 + $0x50] sm:$0xff] %vm534_vm1, %v512_v34  ;;  %v515_v38 = vadd.f32 %v757_v37, %v661_v16  ;;  %v506_v39 = vpop.f32.mrb[19].mxu0 }
 0x2ad   :  { %543 = vst.msk [vmem:[%s1069_s7 + $0x40] sm:$0xff] %vm534_vm1, %v504_v36  ;;  %v507_v40 = vadd.f32 %v661_v16, %v506_v39  ;;  %587 = vrot.lane.b32.xlu0 %v512_v34, %s773_s28 }
 0x2ae   :  { %546 = vst.msk [vmem:[%s1069_s7 + $0x58] sm:$0xff] %vm534_vm1, %v515_v38  ;;  %589 = vrot.lane.b32.xlu1 %v515_v38, %s773_s28 }
 0x2af   :  { %544 = vst.msk [vmem:[%s1069_s7 + $0x48] sm:$0xff] %vm534_vm1, %v507_v40 }
 0x2b1   :  { %v760_v41 = vpop.f32.mrb[20].mxu0  ;;  %583 = vrot.lane.b32.xlu0 %v504_v36, %s773_s28 }
 0x2b2   :  { %v528_v42 = vadd.f32 %v760_v41, %v661_v16  ;;  %v519_v43 = vpop.f32.mrb[21].mxu0  ;;  %585 = vrot.lane.b32.xlu1 %v507_v40, %s773_s28 }
 0x2b3   :  { %v520_v44 = vadd.f32 %v661_v16, %v519_v43  ;;  %v761_v45 = vpop.f32.mrb[22].mxu0 }
 0x2b4   :  { %549 = vst.msk [vmem:[%s1069_s7 + $0x70] sm:$0xff] %vm534_vm1, %v528_v42  ;;  %v531_v46 = vadd.f32 %v761_v45, %v661_v16  ;;  %v522_v47 = vpop.f32.mrb[23].mxu0 }
 0x2b5   :  { %547 = vst.msk [vmem:[%s1069_s7 + $0x60] sm:$0xff] %vm534_vm1, %v520_v44  ;;  %v523_v48 = vadd.f32 %v661_v16, %v522_v47  ;;  %591 = vrot.lane.b32.xlu0 %v520_v44, %s773_s28 }
 0x2b6   :  { %550 = vst.msk [vmem:[%s1069_s7 + $0x78] sm:$0xff] %vm534_vm1, %v531_v46 }
 0x2b7   :  { %548 = vst.msk [vmem:[%s1069_s7 + $0x68] sm:$0xff] %vm534_vm1, %v523_v48  ;;  %593 = vrot.lane.b32.xlu1 %v523_v48, %s773_s28 }
 0x2b9   :  { %595 = vrot.lane.b32.xlu0 %v528_v42, %s773_s28 }
 0x2bb   :  { %597 = vrot.lane.b32.xlu1 %v531_v46, %s773_s28 }
 0x30e   :  { %v572_v49 = vpop.permute.xlu1 %571 }
 0x30f   :  { %617 = vst.msk [vmem:[%s1070_s8 + $0x10] sm:$0xff] %vm534_vm1, %v572_v49  ;;  %v568_v50 = vpop.permute.xlu0 %567 }
 0x310   :  { %615 = vst.msk [vmem:[%s1070_s8] sm:$0xff] %vm534_vm1, %v568_v50 }
 0x312   :  { %v574_v51 = vpop.permute.xlu1 %573 }
 0x313   :  { %618 = vst.msk [vmem:[%s1070_s8 + $0x18] sm:$0xff] %vm534_vm1, %v574_v51  ;;  %v570_v52 = vpop.permute.xlu0 %569 }
 0x314   :  { %616 = vst.msk [vmem:[%s1070_s8 + $0x8] sm:$0xff] %vm534_vm1, %v570_v52 }
 0x317   :  { %v580_v53 = vpop.permute.xlu0 %579 }
 0x318   :  { %621 = vst.msk [vmem:[%s1070_s8 + $0x30] sm:$0xff] %vm534_vm1, %v580_v53  ;;  %v582_v54 = vpop.permute.xlu1 %581 }
 0x319   :  { %622 = vst.msk [vmem:[%s1070_s8 + $0x38] sm:$0xff] %vm534_vm1, %v582_v54 }
 0x31b   :  { %v576_v55 = vpop.permute.xlu0 %575 }
 0x31c   :  { %619 = vst.msk [vmem:[%s1070_s8 + $0x20] sm:$0xff] %vm534_vm1, %v576_v55  ;;  %v578_v56 = vpop.permute.xlu1 %577 }
 0x31d   :  { %620 = vst.msk [vmem:[%s1070_s8 + $0x28] sm:$0xff] %vm534_vm1, %v578_v56 }
 0x31f   :  { %v588_v57 = vpop.permute.xlu0 %587 }
 0x320   :  { %625 = vst.msk [vmem:[%s1070_s8 + $0x50] sm:$0xff] %vm534_vm1, %v588_v57  ;;  %v590_v58 = vpop.permute.xlu1 %589 }
 0x321   :  { %626 = vst.msk [vmem:[%s1070_s8 + $0x58] sm:$0xff] %vm534_vm1, %v590_v58 }
 0x323   :  { %v584_v59 = vpop.permute.xlu0 %583 }
 0x324   :  { %623 = vst.msk [vmem:[%s1070_s8 + $0x40] sm:$0xff] %vm534_vm1, %v584_v59  ;;  %v586_v60 = vpop.permute.xlu1 %585 }
 0x325   :  { %624 = vst.msk [vmem:[%s1070_s8 + $0x48] sm:$0xff] %vm534_vm1, %v586_v60 }
 0x327   :  { %v592_v61 = vpop.permute.xlu0 %591 }
 0x328   :  { %627 = vst.msk [vmem:[%s1070_s8 + $0x60] sm:$0xff] %vm534_vm1, %v592_v61 }
 0x329   :  { %v594_v62 = vpop.permute.xlu1 %593 }
 0x32a   :  { %628 = vst.msk [vmem:[%s1070_s8 + $0x68] sm:$0xff] %vm534_vm1, %v594_v62 }
 0x32b   :  { %v596_v63 = vpop.permute.xlu0 %595 }
 0x32c   :  { %629 = vst.msk [vmem:[%s1070_s8 + $0x70] sm:$0xff] %vm534_vm1, %v596_v63 }
 0x32d   :  { %v598_v0 = vpop.permute.xlu1 %597 }
 0x32e   :  { %630 = vst.msk [vmem:[%s1070_s8 + $0x78] sm:$0xff] %vm534_vm1, %v598_v0 }

</bundles_post_ra>
